<compile_context>
chip_gen: v7x
topology: tpu7x:2x2x1
jax: 0.10.0
libtpu: 0.0.40
codegen_flags: <defaults>
</compile_context>

<pallas_src>
import jax
import jax.numpy as jnp
from jax.experimental import pallas as pl
from jax.experimental.pallas import tpu as pltpu


def _round_up(x, m):
    return (x + m - 1) // m * m


def mlp_kernel(x_ref,
               w1_ref, b1_ref,
               w2_ref, b2_ref,
               w3_ref, b3_ref,
               w4_ref, b4_ref,
               w5_ref, b5_ref,
               o_ref):
    """One batch tile of the 5-layer MLP.  Weights/activations bf16, acc f32."""
    # fc1 + relu (input tile is already bf16 — cast done once in the wrapper)
    h = jnp.dot(x_ref[...], w1_ref[...],
                preferred_element_type=jnp.float32) + b1_ref[...]
    h = jnp.maximum(h, 0.0)

    # fc2 + relu  (+ dropout p=0.5: identity in eval mode)
    h = jnp.dot(h.astype(jnp.bfloat16), w2_ref[...],
                preferred_element_type=jnp.float32) + b2_ref[...]
    h = jnp.maximum(h, 0.0)

    # fc3 + relu
    h = jnp.dot(h.astype(jnp.bfloat16), w3_ref[...],
                preferred_element_type=jnp.float32) + b3_ref[...]
    h = jnp.maximum(h, 0.0)

    # fc4 + relu
    h = jnp.dot(h.astype(jnp.bfloat16), w4_ref[...],
                preferred_element_type=jnp.float32) + b4_ref[...]
    h = jnp.maximum(h, 0.0)

    # fc5 -> lane-dense padded output tile
    out = jnp.dot(h.astype(jnp.bfloat16), w5_ref[...],
                  preferred_element_type=jnp.float32) + b5_ref[...]
    o_ref[...] = out.astype(o_ref.dtype)


def _pad2(a, rows, cols):
    return jnp.pad(a, ((0, rows - a.shape[0]), (0, cols - a.shape[1])))


def prepare_params(params):
    """Zero-pad every layer dim to a multiple of 128 and cast weights to bf16.

    Biases stay f32 (bias-add / ReLU run in f32; v5e VPU has no bf16 ALUs).
    Zero padding preserves the result exactly for linear+ReLU chains.
    """
    padded = {}
    for name in ("fc1", "fc2", "fc3", "fc4", "fc5"):
        w, b = params[name]
        fin, fout = w.shape
        fin_p, fout_p = _round_up(fin, 128), _round_up(fout, 128)
        padded[name] = (_pad2(w, fin_p, fout_p).astype(jnp.bfloat16),
                        _pad2(b, 1, fout_p).astype(jnp.float32))
    return padded


def mlp_forward(x_nchw, params, *, batch_tile=512):
    """x_nchw: [B, C, H, W] float32.  params: dict of (Wi [in,out] f32, bi [1,out] f32)."""
    B = x_nchw.shape[0]
    x = x_nchw.reshape(B, -1)                      # torch.flatten(x, 1)
    D = x.shape[1]

    pp = prepare_params(params)
    (w1, b1), (w2, b2), (w3, b3), (w4, b4), (w5, b5) = (
        pp["fc1"], pp["fc2"], pp["fc3"], pp["fc4"], pp["fc5"])
    out_dim = params["fc5"][0].shape[1]
    D_pad = w1.shape[0]
    out_pad = w5.shape[1]

    # Batch tiling: at least 8 rows (f32 sublane); larger batches stream in
    # tiles of `batch_tile` rows while the (tiny, bf16) weights stay resident.
    TB = min(batch_tile, _round_up(B, 8))
    B_pad = _round_up(B, TB)
    x = _pad2(x, B_pad, D_pad).astype(jnp.bfloat16)   # single cast, in wrapper

    grid = (B_pad // TB,)
    const = lambda shape: pl.BlockSpec(shape, lambda i: (0, 0))  # weights resident

    in_specs = [
        pl.BlockSpec((TB, D_pad), lambda i: (i, 0)),   # activation tile streams
        const(w1.shape), const(b1.shape),
        const(w2.shape), const(b2.shape),
        const(w3.shape), const(b3.shape),
        const(w4.shape), const(b4.shape),
        const(w5.shape), const(b5.shape),
    ]
    out_specs = pl.BlockSpec((TB, out_pad), lambda i: (i, 0))

    dims = [w1.shape, w2.shape, w3.shape, w4.shape, w5.shape]
    flops = 2 * B_pad * sum(fi * fo for fi, fo in dims)
    bytes_accessed = (
        x.size * x.dtype.itemsize
        + sum(w.size * w.dtype.itemsize + b.size * b.dtype.itemsize
              for w, b in pp.values())
        + B_pad * out_pad * 4)

    out = pl.pallas_call(
        mlp_kernel,
        out_shape=jax.ShapeDtypeStruct((B_pad, out_pad), jnp.float32),
        grid_spec=pltpu.PrefetchScalarGridSpec(
            num_scalar_prefetch=0,
            grid=grid,
            in_specs=in_specs,
            out_specs=out_specs,
        ),
        compiler_params=pltpu.CompilerParams(
            # Batch tiles are independent -> shard across v7x's 2 TensorCores.
            dimension_semantics=("parallel",),
        ),
        cost_estimate=pl.CostEstimate(flops=flops, transcendentals=0,
                                      bytes_accessed=bytes_accessed),
    )(x, w1, b1, w2, b2, w3, b3, w4, b4, w5, b5)

    return out[:B, :out_dim]


def init_params(key, input_dim, hidden_dim1, hidden_dim2, output_dim):
    """Uniform init (PyTorch-Linear-style bound 1/sqrt(fan_in)).
    Weights stored [in_dim, out_dim] (torch weight transposed); biases [1, out]."""
    dims = [(input_dim, hidden_dim1),
            (hidden_dim1, hidden_dim1),
            (hidden_dim1, hidden_dim2),
            (hidden_dim2, hidden_dim2),
            (hidden_dim2, output_dim)]
    names = ["fc1", "fc2", "fc3", "fc4", "fc5"]
    params = {}
    keys = jax.random.split(key, 2 * len(dims))
    for i, (name, (fin, fout)) in enumerate(zip(names, dims)):
        bound = 1.0 / jnp.sqrt(jnp.float32(fin))
        w = jax.random.uniform(keys[2 * i], (fin, fout), jnp.float32, -bound, bound)
        b = jax.random.uniform(keys[2 * i + 1], (1, fout), jnp.float32, -bound, bound)
        params[name] = (w, b)
    return params


def reference_forward_mixed(x_nchw, params):
    """Pure-JAX reference with the kernel's exact bf16-weight / f32-acc math."""
    h = x_nchw.reshape(x_nchw.shape[0], -1).astype(jnp.bfloat16)
    for name in ("fc1", "fc2", "fc3", "fc4"):
        w, b = params[name]
        h = jnp.dot(h, w.astype(jnp.bfloat16),
                    preferred_element_type=jnp.float32) + b
        h = jnp.maximum(h, 0.0).astype(jnp.bfloat16)
    w, b = params["fc5"]
    return jnp.dot(h, w.astype(jnp.bfloat16),
                   preferred_element_type=jnp.float32) + b


def reference_forward_f32(x_nchw, params):
    """Full-f32 reference of the PyTorch module's forward (eval mode)."""
    h = x_nchw.reshape(x_nchw.shape[0], -1)
    for name in ("fc1", "fc2", "fc3", "fc4"):
        w, b = params[name]
        h = jnp.maximum(h @ w + b, 0.0)
    w, b = params["fc5"]
    return h @ w + b


if __name__ == "__main__":
    # Shapes consistent with the module: x [B=2, C=4, H=16, W=16]
    # => input_dim = 4*16*16 = 1024, hidden1 = 128, hidden2 = 64, output = 10.
    B, C, H, W = 2, 4, 16, 16
    input_dim, hidden1, hidden2, output_dim = C * H * W, 128, 64, 10

    key = jax.random.PRNGKey(0)
    kx, kp = jax.random.split(key)
    x = jax.random.normal(kx, (B, C, H, W), jnp.float32)
    params = init_params(kp, input_dim, hidden1, hidden2, output_dim)

    out = jax.block_until_ready(mlp_forward(x, params))
    assert out.shape == (B, output_dim)

    # Tight check against a pure-JAX reference using the same mixed precision.
    ref_mixed = reference_forward_mixed(x, params)
    assert jnp.allclose(out, ref_mixed, atol=2e-3, rtol=2e-3), (
        float(jnp.max(jnp.abs(out - ref_mixed))))

    # Loose sanity check against the full-f32 module semantics.
    ref_f32 = reference_forward_f32(x, params)
    assert jnp.allclose(out, ref_f32, atol=5e-2, rtol=5e-2), (
        float(jnp.max(jnp.abs(out - ref_f32))))

    print("KERNEL_OK")
</pallas_src>

<mosaic_0001>
module attributes {stable_mosaic.version = 11 : i64} {
  func.func @mlp_kernel(%arg0: i32, %arg1: memref<8x1024xbf16, #tpu.memory_space<vmem>>, %arg2: memref<1024x128xbf16, #tpu.memory_space<vmem>>, %arg3: memref<1x128xf32, #tpu.memory_space<vmem>>, %arg4: memref<128x128xbf16, #tpu.memory_space<vmem>>, %arg5: memref<1x128xf32, #tpu.memory_space<vmem>>, %arg6: memref<128x128xbf16, #tpu.memory_space<vmem>>, %arg7: memref<1x128xf32, #tpu.memory_space<vmem>>, %arg8: memref<128x128xbf16, #tpu.memory_space<vmem>>, %arg9: memref<1x128xf32, #tpu.memory_space<vmem>>, %arg10: memref<128x128xbf16, #tpu.memory_space<vmem>>, %arg11: memref<1x128xf32, #tpu.memory_space<vmem>>, %arg12: memref<8x128xf32, #tpu.memory_space<vmem>>) attributes {dimension_semantics = [#tpu.dimension_semantics<parallel>], iteration_bounds = array<i64: 1>, scalar_prefetch = 0 : i64, scratch_operands = 0 : i64, tpu.core_type = #tpu.core_type<tc>, window_params = [{transform_indices = @transform_0, window_bounds = array<i64: 8, 1024>}, {pipeline_mode = #tpu.pipeline_mode<synchronous>, transform_indices = @transform_1, window_bounds = array<i64: 1024, 128>}, {pipeline_mode = #tpu.pipeline_mode<synchronous>, transform_indices = @transform_2, window_bounds = array<i64: 1, 128>}, {pipeline_mode = #tpu.pipeline_mode<synchronous>, transform_indices = @transform_3, window_bounds = array<i64: 128, 128>}, {pipeline_mode = #tpu.pipeline_mode<synchronous>, transform_indices = @transform_4, window_bounds = array<i64: 1, 128>}, {pipeline_mode = #tpu.pipeline_mode<synchronous>, transform_indices = @transform_5, window_bounds = array<i64: 128, 128>}, {pipeline_mode = #tpu.pipeline_mode<synchronous>, transform_indices = @transform_6, window_bounds = array<i64: 1, 128>}, {pipeline_mode = #tpu.pipeline_mode<synchronous>, transform_indices = @transform_7, window_bounds = array<i64: 128, 128>}, {pipeline_mode = #tpu.pipeline_mode<synchronous>, transform_indices = @transform_8, window_bounds = array<i64: 1, 128>}, {pipeline_mode = #tpu.pipeline_mode<synchronous>, transform_indices = @transform_9, window_bounds = array<i64: 128, 128>}, {pipeline_mode = #tpu.pipeline_mode<synchronous>, transform_indices = @transform_10, window_bounds = array<i64: 1, 128>}, {transform_indices = @transform_11, window_bounds = array<i64: 8, 128>}]} {
    %c0 = arith.constant 0 : index
    %c0_0 = arith.constant 0 : index
    %0 = vector.load %arg1[%c0, %c0_0] : memref<8x1024xbf16, #tpu.memory_space<vmem>>, vector<8x1024xbf16>
    %c0_1 = arith.constant 0 : index
    %c0_2 = arith.constant 0 : index
    %1 = vector.load %arg2[%c0_1, %c0_2] : memref<1024x128xbf16, #tpu.memory_space<vmem>>, vector<1024x128xbf16>
    %cst = arith.constant dense<0.000000e+00> : vector<8x128xf32>
    %2 = tpu.matmul %0, %1, %cst {dimension_numbers = #tpu.dot_dimension_numbers<[1], [0], [0], [1], [0, 0, 1, 1], [], []>} : vector<8x1024xbf16>, vector<1024x128xbf16>, vector<8x128xf32> -> vector<8x128xf32>
    %c0_3 = arith.constant 0 : index
    %c0_4 = arith.constant 0 : index
    %3 = vector.load %arg3[%c0_3, %c0_4] : memref<1x128xf32, #tpu.memory_space<vmem>>, vector<1x128xf32>
    %4 = vector.broadcast %3 : vector<1x128xf32> to vector<8x128xf32>
    %5 = arith.addf %2, %4 : vector<8x128xf32>
    %cst_5 = arith.constant 0.000000e+00 : f32
    %6 = vector.broadcast %cst_5 : f32 to vector<8x128xf32>
    %7 = arith.maximumf %5, %6 : vector<8x128xf32>
    %8 = arith.truncf %7 : vector<8x128xf32> to vector<8x128xbf16>
    %c0_6 = arith.constant 0 : index
    %c0_7 = arith.constant 0 : index
    %9 = vector.load %arg4[%c0_6, %c0_7] : memref<128x128xbf16, #tpu.memory_space<vmem>>, vector<128x128xbf16>
    %cst_8 = arith.constant dense<0.000000e+00> : vector<8x128xf32>
    %10 = tpu.matmul %8, %9, %cst_8 {dimension_numbers = #tpu.dot_dimension_numbers<[1], [0], [0], [1], [0, 0, 1, 1], [], []>} : vector<8x128xbf16>, vector<128x128xbf16>, vector<8x128xf32> -> vector<8x128xf32>
    %c0_9 = arith.constant 0 : index
    %c0_10 = arith.constant 0 : index
    %11 = vector.load %arg5[%c0_9, %c0_10] : memref<1x128xf32, #tpu.memory_space<vmem>>, vector<1x128xf32>
    %12 = vector.broadcast %11 : vector<1x128xf32> to vector<8x128xf32>
    %13 = arith.addf %10, %12 : vector<8x128xf32>
    %cst_11 = arith.constant 0.000000e+00 : f32
    %14 = vector.broadcast %cst_11 : f32 to vector<8x128xf32>
    %15 = arith.maximumf %13, %14 : vector<8x128xf32>
    %16 = arith.truncf %15 : vector<8x128xf32> to vector<8x128xbf16>
    %c0_12 = arith.constant 0 : index
    %c0_13 = arith.constant 0 : index
    %17 = vector.load %arg6[%c0_12, %c0_13] : memref<128x128xbf16, #tpu.memory_space<vmem>>, vector<128x128xbf16>
    %cst_14 = arith.constant dense<0.000000e+00> : vector<8x128xf32>
    %18 = tpu.matmul %16, %17, %cst_14 {dimension_numbers = #tpu.dot_dimension_numbers<[1], [0], [0], [1], [0, 0, 1, 1], [], []>} : vector<8x128xbf16>, vector<128x128xbf16>, vector<8x128xf32> -> vector<8x128xf32>
    %c0_15 = arith.constant 0 : index
    %c0_16 = arith.constant 0 : index
    %19 = vector.load %arg7[%c0_15, %c0_16] : memref<1x128xf32, #tpu.memory_space<vmem>>, vector<1x128xf32>
    %20 = vector.broadcast %19 : vector<1x128xf32> to vector<8x128xf32>
    %21 = arith.addf %18, %20 : vector<8x128xf32>
    %cst_17 = arith.constant 0.000000e+00 : f32
    %22 = vector.broadcast %cst_17 : f32 to vector<8x128xf32>
    %23 = arith.maximumf %21, %22 : vector<8x128xf32>
    %24 = arith.truncf %23 : vector<8x128xf32> to vector<8x128xbf16>
    %c0_18 = arith.constant 0 : index
    %c0_19 = arith.constant 0 : index
    %25 = vector.load %arg8[%c0_18, %c0_19] : memref<128x128xbf16, #tpu.memory_space<vmem>>, vector<128x128xbf16>
    %cst_20 = arith.constant dense<0.000000e+00> : vector<8x128xf32>
    %26 = tpu.matmul %24, %25, %cst_20 {dimension_numbers = #tpu.dot_dimension_numbers<[1], [0], [0], [1], [0, 0, 1, 1], [], []>} : vector<8x128xbf16>, vector<128x128xbf16>, vector<8x128xf32> -> vector<8x128xf32>
    %c0_21 = arith.constant 0 : index
    %c0_22 = arith.constant 0 : index
    %27 = vector.load %arg9[%c0_21, %c0_22] : memref<1x128xf32, #tpu.memory_space<vmem>>, vector<1x128xf32>
    %28 = vector.broadcast %27 : vector<1x128xf32> to vector<8x128xf32>
    %29 = arith.addf %26, %28 : vector<8x128xf32>
    %cst_23 = arith.constant 0.000000e+00 : f32
    %30 = vector.broadcast %cst_23 : f32 to vector<8x128xf32>
    %31 = arith.maximumf %29, %30 : vector<8x128xf32>
    %32 = arith.truncf %31 : vector<8x128xf32> to vector<8x128xbf16>
    %c0_24 = arith.constant 0 : index
    %c0_25 = arith.constant 0 : index
    %33 = vector.load %arg10[%c0_24, %c0_25] : memref<128x128xbf16, #tpu.memory_space<vmem>>, vector<128x128xbf16>
    %cst_26 = arith.constant dense<0.000000e+00> : vector<8x128xf32>
    %34 = tpu.matmul %32, %33, %cst_26 {dimension_numbers = #tpu.dot_dimension_numbers<[1], [0], [0], [1], [0, 0, 1, 1], [], []>} : vector<8x128xbf16>, vector<128x128xbf16>, vector<8x128xf32> -> vector<8x128xf32>
    %c0_27 = arith.constant 0 : index
    %c0_28 = arith.constant 0 : index
    %35 = vector.load %arg11[%c0_27, %c0_28] : memref<1x128xf32, #tpu.memory_space<vmem>>, vector<1x128xf32>
    %36 = vector.broadcast %35 : vector<1x128xf32> to vector<8x128xf32>
    %37 = arith.addf %34, %36 : vector<8x128xf32>
    %c0_29 = arith.constant 0 : index
    %c0_30 = arith.constant 0 : index
    %38 = vector.load %arg12[%c0_29, %c0_30] : memref<8x128xf32, #tpu.memory_space<vmem>>, vector<8x128xf32>
    tpu.vector_store %arg12[%c0_29, %c0_30], %37 {strides = array<i32>} : memref<8x128xf32, #tpu.memory_space<vmem>>, vector<8x128xf32>,
    return
  }
  func.func @transform_0(%arg0: i32) -> (i32, i32) {
    %c0_i32 = arith.constant 0 : i32
    %c0_i32_0 = arith.constant 0 : i32
    return %arg0, %c0_i32 : i32, i32
  }
  func.func @transform_1(%arg0: i32) -> (i32, i32) {
    %c0_i32 = arith.constant 0 : i32
    %c0_i32_0 = arith.constant 0 : i32
    %c0_i32_1 = arith.constant 0 : i32
    return %c0_i32, %c0_i32_0 : i32, i32
  }
  func.func @transform_2(%arg0: i32) -> (i32, i32) {
    %c0_i32 = arith.constant 0 : i32
    %c0_i32_0 = arith.constant 0 : i32
    %c0_i32_1 = arith.constant 0 : i32
    return %c0_i32, %c0_i32_0 : i32, i32
  }
  func.func @transform_3(%arg0: i32) -> (i32, i32) {
    %c0_i32 = arith.constant 0 : i32
    %c0_i32_0 = arith.constant 0 : i32
    %c0_i32_1 = arith.constant 0 : i32
    return %c0_i32, %c0_i32_0 : i32, i32
  }
  func.func @transform_4(%arg0: i32) -> (i32, i32) {
    %c0_i32 = arith.constant 0 : i32
    %c0_i32_0 = arith.constant 0 : i32
    %c0_i32_1 = arith.constant 0 : i32
    return %c0_i32, %c0_i32_0 : i32, i32
  }
  func.func @transform_5(%arg0: i32) -> (i32, i32) {
    %c0_i32 = arith.constant 0 : i32
    %c0_i32_0 = arith.constant 0 : i32
    %c0_i32_1 = arith.constant 0 : i32
    return %c0_i32, %c0_i32_0 : i32, i32
  }
  func.func @transform_6(%arg0: i32) -> (i32, i32) {
    %c0_i32 = arith.constant 0 : i32
    %c0_i32_0 = arith.constant 0 : i32
    %c0_i32_1 = arith.constant 0 : i32
    return %c0_i32, %c0_i32_0 : i32, i32
  }
  func.func @transform_7(%arg0: i32) -> (i32, i32) {
    %c0_i32 = arith.constant 0 : i32
    %c0_i32_0 = arith.constant 0 : i32
    %c0_i32_1 = arith.constant 0 : i32
    return %c0_i32, %c0_i32_0 : i32, i32
  }
  func.func @transform_8(%arg0: i32) -> (i32, i32) {
    %c0_i32 = arith.constant 0 : i32
    %c0_i32_0 = arith.constant 0 : i32
    %c0_i32_1 = arith.constant 0 : i32
    return %c0_i32, %c0_i32_0 : i32, i32
  }
  func.func @transform_9(%arg0: i32) -> (i32, i32) {
    %c0_i32 = arith.constant 0 : i32
    %c0_i32_0 = arith.constant 0 : i32
    %c0_i32_1 = arith.constant 0 : i32
    return %c0_i32, %c0_i32_0 : i32, i32
  }
  func.func @transform_10(%arg0: i32) -> (i32, i32) {
    %c0_i32 = arith.constant 0 : i32
    %c0_i32_0 = arith.constant 0 : i32
    %c0_i32_1 = arith.constant 0 : i32
    return %c0_i32, %c0_i32_0 : i32, i32
  }
  func.func @transform_11(%arg0: i32) -> (i32, i32) {
    %c0_i32 = arith.constant 0 : i32
    %c0_i32_0 = arith.constant 0 : i32
    return %arg0, %c0_i32 : i32, i32
  }
}

</mosaic_0001>

<bundles_post_ra>
// kernel: tpu_custom_call.1
= control target key start
LH: loop header
LB: loop body
LE: loop exit
PB: predicated region body
PF: predicated region fallthrough
CT: control target
= control target key end

     0   :  { %16 = vsyncpa [#allocation3], 0  ;;  %s2119_s0 = inlined_call_operand.hbm [shape: bf16[8,1024], index: 0, kind: input, shape index: {}]   ;;  %s2120_s1 = inlined_call_operand.hbm [shape: bf16[1024,128], index: 1, kind: input, shape index: {}]   ;;  %s2121_s2 = inlined_call_operand.vmem [shape: f32[1,128], index: 2, kind: input, shape index: {}]   ;;  %s2122_s3 = inlined_call_operand.hbm [shape: bf16[128,128], index: 3, kind: input, shape index: {}]   ;;  %s2123_s4 = inlined_call_operand.vmem [shape: f32[1,128], index: 4, kind: input, shape index: {}]   ;;  %s2124_s5 = inlined_call_operand.hbm [shape: bf16[128,128], index: 5, kind: input, shape index: {}]   ;;  %s2125_s6 = inlined_call_operand.vmem [shape: f32[1,128], index: 6, kind: input, shape index: {}]   ;;  %s2126_s7 = inlined_call_operand.hbm [shape: bf16[128,128], index: 7, kind: input, shape index: {}]   ;;  %s2127_s8 = inlined_call_operand.vmem [shape: f32[1,128], index: 8, kind: input, shape index: {}]   ;;  %s2128_s9 = inlined_call_operand.hbm [shape: bf16[128,128], index: 9, kind: input, shape index: {}]   ;;  %s2129_s10 = inlined_call_operand.vmem [shape: f32[1,128], index: 10, kind: input, shape index: {}]   ;;  %s2130_s11 = inlined_call_operand.hbm [shape: f32[8,128], index: 11, kind: output, shape index: {}]  }
   0x1   :  { %17 = vsyncpa [#allocation6], 0 }
   0x2   :  { %18 = vsyncpa [#allocation9], 0 }
   0x3   :  { %19 = vsyncpa [#allocation12], 0 }
   0x4   :  { %20 = vsyncpa [#allocation4], 0  ;;  %s1894_s17 = smov [#allocation5]   ;;  %s1730_s21 = scalar_lea.hbm %s2120_s1, 8192 }
   0x5   :  { %s36_s18 = sshll.u32 %s1894_s17, 4  ;;  %p1731_p0 = scmp.ne.s32.totalorder %s2120_s1, %s1730_s21  ;;  %s37_s18 = int_to_ptr.vmem [resolvable:$true] %s36_s18 }
   0x6   :  { %p1734_p1 = scmp.lt.u32.totalorder %s1730_s21, %s2120_s1 }
   0x8   :  { %p1736_p2 = pnand %p1734_p1, %p1731_p0 }
   0xa   :  { %1739 = shalt.err (!%p1736_p2)
}
   0xb   :  { %s1740_s26 = scalar_lea.vmem %s37_s18, 8192  ;;  %p1745_p4 = scmp.lt.s32.totalorder %s37_s18, %s37_s18 }
   0xc   :  { %p1741_p3 = scmp.ne.s32.totalorder %s37_s18, %s1740_s26  ;;  %p1746_p5 = scmp.lt.s32.totalorder %s1740_s26, %s1740_s26 }
   0xe   :  { %p1747_p6 = por %p1746_p5, %p1745_p4 }
  0x10   :  { %p1748_p7 = pnand %p1747_p6, %p1741_p3 }
  0x12   :  { %1751 = shalt.err (!%p1748_p7)
}
  0x13   :  { %s1895_s27 = smov 64   ;;  %s1896_s28 = smov 4  }
  0x14   :  { %42 = dma.hbm_to_vmem [thread:$0]  %s2120_s1, 8192, %s37_s18, [#allocation6], %s1895_s27, %s1895_s27, %s1896_s28  }
  0x15   :  { %s1897_s12 = smov [#allocation8]   ;;  %s1898_s14 = smov [#allocation2]  }
  0x16   :  { %s64_s13 = sshll.u32 %s1897_s12, 4  ;;  %s27_s15 = sshll.u32 %s1898_s14, 4  ;;  %s65_s13 = int_to_ptr.vmem [resolvable:$true] %s64_s13  ;;  %s28_s15 = int_to_ptr.vmem [resolvable:$true] %s27_s15 }
  0x17   :  { %s1752_s19 = scalar_lea.hbm %s2124_s5, 1024 }
  0x18   :  { %p1753_p8 = scmp.ne.s32.totalorder %s2124_s5, %s1752_s19  ;;  %p1756_p9 = scmp.lt.u32.totalorder %s1752_s19, %s2124_s5 }
  0x1a   :  { %p1758_p10 = pnand %p1756_p9, %p1753_p8 }
  0x1c   :  { %1761 = shalt.err (!%p1758_p10)
}
  0x1d   :  { %s1762_s1 = scalar_lea.vmem %s65_s13, 1024  ;;  %p1767_p12 = scmp.lt.s32.totalorder %s65_s13, %s65_s13 }
  0x1e   :  { %p1763_p11 = scmp.ne.s32.totalorder %s65_s13, %s1762_s1  ;;  %p1768_p13 = scmp.lt.s32.totalorder %s1762_s1, %s1762_s1 }
  0x20   :  { %p1769_p0 = por %p1768_p13, %p1767_p12 }
  0x22   :  { %p1770_p1 = pnand %p1769_p0, %p1763_p11 }
  0x24   :  { %1773 = shalt.err (!%p1770_p1)
}
  0x25   :  { %70 = dma.hbm_to_vmem [thread:$0]  %s2124_s5, 1024, %s65_s13, [#allocation9], %s1895_s27, %s1895_s27, %s1896_s28  }
  0x26   :  { %s1774_s29 = scalar_lea.hbm %s2119_s0, 512 }
  0x27   :  { %p1775_p2 = scmp.ne.s32.totalorder %s2119_s0, %s1774_s29  ;;  %p1778_p3 = scmp.lt.u32.totalorder %s1774_s29, %s2119_s0 }
  0x29   :  { %p1780_p4 = pnand %p1778_p3, %p1775_p2 }
  0x2b   :  { %1783 = shalt.err (!%p1780_p4)
}
  0x2c   :  { %s1784_s17 = scalar_lea.vmem %s28_s15, 512  ;;  %p1789_p6 = scmp.lt.s32.totalorder %s28_s15, %s28_s15 }
  0x2d   :  { %p1785_p5 = scmp.ne.s32.totalorder %s28_s15, %s1784_s17  ;;  %p1790_p7 = scmp.lt.s32.totalorder %s1784_s17, %s1784_s17 }
  0x2f   :  { %p1791_p8 = por %p1790_p7, %p1789_p6 }
  0x31   :  { %p1792_p9 = pnand %p1791_p8, %p1785_p5 }
  0x33   :  { %1795 = shalt.err (!%p1792_p9)
}
  0x34   :  { %30 = dma.hbm_to_vmem [thread:$0]  %s2119_s0, 512, %s28_s15, [#allocation3]  }
  0x35   :  { %s1899_s19 = smov [#allocation7]   ;;  %s1900_s21 = smov [#allocation10]  }
  0x36   :  { %s50_s20 = sshll.u32 %s1899_s19, 4  ;;  %s78_s22 = sshll.u32 %s1900_s21, 4  ;;  %s51_s20 = int_to_ptr.vmem [resolvable:$true] %s50_s20  ;;  %s79_s22 = int_to_ptr.vmem [resolvable:$true] %s78_s22 }
  0x37   :  { %s1796_s18 = scalar_lea.hbm %s2122_s3, 1024 }
  0x38   :  { %p1797_p10 = scmp.ne.s32.totalorder %s2122_s3, %s1796_s18  ;;  %p1800_p11 = scmp.lt.u32.totalorder %s1796_s18, %s2122_s3 }
  0x3a   :  { %p1802_p12 = pnand %p1800_p11, %p1797_p10 }
  0x3c   :  { %1805 = shalt.err (!%p1802_p12)
}
  0x3d   :  { %s1806_s0 = scalar_lea.vmem %s51_s20, 1024  ;;  %p1811_p0 = scmp.lt.s32.totalorder %s51_s20, %s51_s20 }
  0x3e   :  { %p1807_p13 = scmp.ne.s32.totalorder %s51_s20, %s1806_s0  ;;  %p1812_p1 = scmp.lt.s32.totalorder %s1806_s0, %s1806_s0 }
  0x40   :  { %p1813_p2 = por %p1812_p1, %p1811_p0 }
  0x42   :  { %p1814_p3 = pnand %p1813_p2, %p1807_p13 }
  0x44   :  { %1817 = shalt.err (!%p1814_p3)
}
  0x45   :  { %56 = dma.hbm_to_vmem [thread:$0]  %s2122_s3, 1024, %s51_s20, [#allocation6], %s1895_s27, %s1895_s27, %s1896_s28  }
  0x46   :  { %s1818_s16 = scalar_lea.hbm %s2126_s7, 1024 }
  0x47   :  { %p1819_p4 = scmp.ne.s32.totalorder %s2126_s7, %s1818_s16  ;;  %p1822_p5 = scmp.lt.u32.totalorder %s1818_s16, %s2126_s7 }
  0x49   :  { %p1824_p6 = pnand %p1822_p5, %p1819_p4 }
  0x4b   :  { %1827 = shalt.err (!%p1824_p6)
}
  0x4c   :  { %s1828_s21 = scalar_lea.vmem %s79_s22, 1024  ;;  %p1833_p8 = scmp.lt.s32.totalorder %s79_s22, %s79_s22 }
  0x4d   :  { %p1829_p7 = scmp.ne.s32.totalorder %s79_s22, %s1828_s21  ;;  %p1834_p9 = scmp.lt.s32.totalorder %s1828_s21, %s1828_s21 }
  0x4f   :  { %p1835_p10 = por %p1834_p9, %p1833_p8 }
  0x51   :  { %p1836_p11 = pnand %p1835_p10, %p1829_p7 }
  0x53   :  { %1839 = shalt.err (!%p1836_p11)
}
  0x54   :  { %84 = dma.hbm_to_vmem [thread:$0]  %s2126_s7, 1024, %s79_s22, [#allocation9], %s1895_s27, %s1895_s27, %s1896_s28  }
  0x55   :  { %s1901_s23 = smov [#allocation11]   ;;  %s1840_s25 = scalar_lea.hbm %s2128_s9, 1024 }
  0x56   :  { %s92_s1 = sshll.u32 %s1901_s23, 4  ;;  %p1841_p12 = scmp.ne.s32.totalorder %s2128_s9, %s1840_s25  ;;  %s93_s1 = int_to_ptr.vmem [resolvable:$true] %s92_s1 }
  0x57   :  { %p1844_p13 = scmp.lt.u32.totalorder %s1840_s25, %s2128_s9 }
  0x59   :  { %p1846_p0 = pnand %p1844_p13, %p1841_p12 }
  0x5b   :  { %1849 = shalt.err (!%p1846_p0)
}
  0x5c   :  { %s1850_s30 = scalar_lea.vmem %s93_s1, 1024  ;;  %p1855_p2 = scmp.lt.s32.totalorder %s93_s1, %s93_s1 }
  0x5d   :  { %p1851_p1 = scmp.ne.s32.totalorder %s93_s1, %s1850_s30  ;;  %p1856_p3 = scmp.lt.s32.totalorder %s1850_s30, %s1850_s30 }
  0x5f   :  { %p1857_p4 = por %p1856_p3, %p1855_p2 }
  0x61   :  { %p1858_p5 = pnand %p1857_p4, %p1851_p1 }
  0x63   :  { %1861 = shalt.err (!%p1858_p5)
}
  0x64   :  { %98 = dma.hbm_to_vmem [thread:$0]  %s2128_s9, 1024, %s93_s1, [#allocation12], %s1895_s27, %s1895_s27, %s1896_s28  }
  0x65   :  { %1884 = dma.done.wait [#allocation3], 512  }
  0x66   :  { %1885 = vsyncadd [#allocation3], 4294966784 }
  0x67   :  { %1886 = dma.done.wait [#allocation6], 9216  }
  0x68   :  { %1887 = vsyncadd [#allocation6], 4294958080 }
  0x69   :  { %1888 = dma.done.wait [#allocation9], 2048  }
  0x6a   :  { %1889 = vsyncadd [#allocation9], 4294965248 }
  0x6b   :  { %1890 = dma.done.wait [#allocation12], 1024  }
  0x6c   :  { %1891 = vsyncadd [#allocation12], 4294966272  ;;  %v1626_v0 = vld [vmem:[#allocation5 + $0x40] sm:$0xff]   ;;  %v1630_v4 = vld [vmem:[#allocation5 + $0x48] sm:$0xff]   ;;  %vm1903_vm0 = vmmov 0   ;;  %s1904_s5 = smov [#allocation13]  }
  0x6d   :  { %v1627_v1 = vld [vmem:[#allocation5 + $0xc0] sm:$0xff]   ;;  %1411 = vmatprep.subr.bf16.mxu0 %v1626_v0  ;;  %v1631_v5 = vld [vmem:[#allocation5 + $0xc8] sm:$0xff]   ;;  %v1634_v8 = vld [vmem:[#allocation5 + $0x50] sm:$0xff]   ;;  %s1290_s13 = sshll.u32 %s1904_s5, 4  ;;  %s1291_s13 = int_to_ptr.vmem [resolvable:$true] %s1290_s13 }
  0x6e   :  { %v1628_v2 = vld [vmem:[#allocation5] sm:$0xff]   ;;  %1433 = vmatprep.subr.bf16.mxu1 %v1627_v1  ;;  %v1632_v6 = vld [vmem:[#allocation5 + $0x8] sm:$0xff]   ;;  %v1635_v9 = vld [vmem:[#allocation5 + $0xd0] sm:$0xff]   ;;  %p1867_p7 = scmp.lt.s32.totalorder %s1291_s13, %s1291_s13 }
  0x6f   :  { %v1629_v3 = vld [vmem:[#allocation5 + $0x80] sm:$0xff]   ;;  %1412 = vmatpush3.bf16.msra.mxu0 %v1628_v2  ;;  %v1633_v7 = vld [vmem:[#allocation5 + $0x88] sm:$0xff]   ;;  %v1636_v10 = vld [vmem:[#allocation5 + $0x10] sm:$0xff]  }
  0x70   :  { %1434 = vmatpush3.bf16.msra.mxu1 %v1629_v3  ;;  %1413 = vmatprep.subr.bf16.mxu0 %v1630_v4  ;;  %v1637_v11 = vld [vmem:[#allocation5 + $0x90] sm:$0xff]   ;;  %v1638_v12 = vld [vmem:[#allocation5 + $0x58] sm:$0xff]   ;;  %v1642_v16 = vld [vmem:[#allocation5 + $0x60] sm:$0xff]  }
  0x71   :  { %1435 = vmatprep.subr.bf16.mxu1 %v1631_v5  ;;  %v1639_v13 = vld [vmem:[#allocation5 + $0xd8] sm:$0xff]   ;;  %v1643_v17 = vld [vmem:[#allocation5 + $0xe0] sm:$0xff]   ;;  %v1646_v20 = vld [vmem:[#allocation5 + $0x68] sm:$0xff]  }
  0x72   :  { %v1640_v14 = vld [vmem:[#allocation5 + $0x18] sm:$0xff]   ;;  %v1644_v18 = vld [vmem:[#allocation5 + $0x20] sm:$0xff]   ;;  %v1647_v21 = vld [vmem:[#allocation5 + $0xe8] sm:$0xff]  }
  0x73   :  { %1414 = vmatpush3.bf16.msra.mxu0 %v1632_v6  ;;  %v1641_v15 = vld [vmem:[#allocation5 + $0x98] sm:$0xff]   ;;  %v1645_v19 = vld [vmem:[#allocation5 + $0xa0] sm:$0xff]   ;;  %v1648_v22 = vld [vmem:[#allocation5 + $0x28] sm:$0xff]  }
  0x74   :  { %1436 = vmatpush3.bf16.msra.mxu1 %v1633_v7  ;;  %1415 = vmatprep.subr.bf16.mxu0 %v1634_v8  ;;  %v1649_v23 = vld [vmem:[#allocation5 + $0xa8] sm:$0xff]   ;;  %v1650_v24 = vld [vmem:[#allocation5 + $0x70] sm:$0xff]   ;;  %v1654_v28 = vld [vmem:[#allocation5 + $0x78] sm:$0xff]  }
  0x75   :  { %1437 = vmatprep.subr.bf16.mxu1 %v1635_v9  ;;  %v1651_v25 = vld [vmem:[#allocation5 + $0xf0] sm:$0xff]   ;;  %v1655_v29 = vld [vmem:[#allocation5 + $0xf8] sm:$0xff]   ;;  %v120_v32 = vld [vmem:[#allocation2] sm:$0xff] }
  0x76   :  { %v1652_v26 = vld [vmem:[#allocation5 + $0x30] sm:$0xff]   ;;  %v1656_v30 = vld [vmem:[#allocation5 + $0x38] sm:$0xff]   ;;  %v121_v33 = vld [vmem:[#allocation2 + $0x8] sm:$0xff]  ;;  %v1303_v34 = vcombine.low %v120_v32, %v120_v32  ;;  %v1304_v35 = vcombine.high %v120_v32, %v120_v32 }
  0x77   :  { %1416 = vmatpush3.bf16.msra.mxu0 %v1636_v10  ;;  %v1653_v27 = vld [vmem:[#allocation5 + $0xb0] sm:$0xff]   ;;  %v1657_v31 = vld [vmem:[#allocation5 + $0xb8] sm:$0xff]   ;;  %v1305_v36 = vcombine.low %v121_v33, %v121_v33  ;;  %v1306_v37 = vcombine.high %v121_v33, %v121_v33  ;;  %v1662_v38 = vld [vmem:[#allocation5 + $0x140] sm:$0xff]  }
  0x78   :  { %1438 = vmatpush3.bf16.msra.mxu1 %v1637_v11  ;;  %1417 = vmatprep.subr.bf16.mxu0 %v1638_v12  ;;  %v1663_v39 = vld [vmem:[#allocation5 + $0x1c0] sm:$0xff]   ;;  %v1666_v42 = vld [vmem:[#allocation5 + $0x148] sm:$0xff]   ;;  %v1670_v46 = vld [vmem:[#allocation5 + $0x150] sm:$0xff]  }
  0x79   :  { %1439 = vmatprep.subr.bf16.mxu1 %v1639_v13  ;;  %703 = vmatprep.mubr.bf16.mxu0 %v1304_v35  ;;  %v1664_v40 = vld [vmem:[#allocation5 + $0x100] sm:$0xff]   ;;  %v1667_v43 = vld [vmem:[#allocation5 + $0x1c8] sm:$0xff]   ;;  %v1671_v47 = vld [vmem:[#allocation5 + $0x1d0] sm:$0xff]   ;;  %v1902_v13 = vmov 0.0  }
  0x7a   :  { %743 = vmatprep.mubr.bf16.mxu1 %v1306_v37  ;;  %v1665_v41 = vld [vmem:[#allocation5 + $0x180] sm:$0xff]   ;;  %v1668_v44 = vld [vmem:[#allocation5 + $0x108] sm:$0xff]   ;;  %v1672_v48 = vld [vmem:[#allocation5 + $0x110] sm:$0xff]  }
  0x7b   :  { %1418 = vmatpush3.bf16.msra.mxu0 %v1640_v14  ;;  %v1669_v45 = vld [vmem:[#allocation5 + $0x188] sm:$0xff]   ;;  %v1673_v49 = vld [vmem:[#allocation5 + $0x190] sm:$0xff]   ;;  %v1674_v50 = vld [vmem:[#allocation5 + $0x158] sm:$0xff]  }
  0x7c   :  { %1440 = vmatpush3.bf16.msra.mxu1 %v1641_v15  ;;  %1419 = vmatprep.subr.bf16.mxu0 %v1642_v16  ;;  %v1675_v51 = vld [vmem:[#allocation5 + $0x1d8] sm:$0xff]   ;;  %v1678_v54 = vld [vmem:[#allocation5 + $0x160] sm:$0xff]   ;;  %v1682_v58 = vld [vmem:[#allocation5 + $0x168] sm:$0xff]  }
  0x7d   :  { %1441 = vmatprep.subr.bf16.mxu1 %v1643_v17  ;;  %v1676_v52 = vld [vmem:[#allocation5 + $0x118] sm:$0xff]   ;;  %v1679_v55 = vld [vmem:[#allocation5 + $0x1e0] sm:$0xff]   ;;  %v1683_v59 = vld [vmem:[#allocation5 + $0x1e8] sm:$0xff]  }
  0x7e   :  { %v1677_v53 = vld [vmem:[#allocation5 + $0x198] sm:$0xff]   ;;  %v1680_v56 = vld [vmem:[#allocation5 + $0x120] sm:$0xff]   ;;  %v1684_v60 = vld [vmem:[#allocation5 + $0x128] sm:$0xff]  }
  0x7f   :  { %1420 = vmatpush3.bf16.msra.mxu0 %v1644_v18  ;;  %v1681_v57 = vld [vmem:[#allocation5 + $0x1a0] sm:$0xff]   ;;  %v1685_v61 = vld [vmem:[#allocation5 + $0x1a8] sm:$0xff]   ;;  %v1686_v62 = vld [vmem:[#allocation5 + $0x170] sm:$0xff]  }
  0x80   :  { %1442 = vmatpush3.bf16.msra.mxu1 %v1645_v19  ;;  %1421 = vmatprep.subr.bf16.mxu0 %v1646_v20  ;;  %v1687_v63 = vld [vmem:[#allocation5 + $0x1f0] sm:$0xff]   ;;  %v1690_v2 = vld [vmem:[#allocation5 + $0x178] sm:$0xff]   ;;  %v1698_v12 = vld [vmem:[#allocation7] sm:$0xff]  }
  0x81   :  { %1443 = vmatprep.subr.bf16.mxu1 %v1647_v21  ;;  %v1688_v0 = vld [vmem:[#allocation5 + $0x130] sm:$0xff]   ;;  %v1691_v3 = vld [vmem:[#allocation5 + $0x1f8] sm:$0xff]   ;;  %v1699_v14 = vld [vmem:[#allocation7 + $0x8] sm:$0xff]  }
  0x82   :  { %v1689_v1 = vld [vmem:[#allocation5 + $0x1b0] sm:$0xff]   ;;  %v1692_v4 = vld [vmem:[#allocation5 + $0x138] sm:$0xff]   ;;  %v1702_v17 = vld [vmem:[#allocation7 + $0x20] sm:$0xff]  }
  0x83   :  { %1422 = vmatpush3.bf16.msra.mxu0 %v1648_v22  ;;  %v1693_v5 = vld [vmem:[#allocation5 + $0x1b8] sm:$0xff]   ;;  %v122_v6 = vld [vmem:[#allocation2 + $0x10] sm:$0xff]  ;;  %v1703_v18 = vld [vmem:[#allocation7 + $0x28] sm:$0xff]  }
  0x84   :  { %1444 = vmatpush3.bf16.msra.mxu1 %v1649_v23  ;;  %1423 = vmatprep.subr.bf16.mxu0 %v1650_v24  ;;  %v1307_v7 = vcombine.low %v122_v6, %v122_v6  ;;  %v1308_v8 = vcombine.high %v122_v6, %v122_v6  ;;  %v123_v9 = vld [vmem:[#allocation2 + $0x18] sm:$0xff]  ;;  %v1700_v15 = vld [vmem:[#allocation7 + $0x10] sm:$0xff]   ;;  %v1706_v21 = vld [vmem:[#allocation8] sm:$0xff]  }
  0x85   :  { %1445 = vmatprep.subr.bf16.mxu1 %v1651_v25  ;;  %v1309_v10 = vcombine.low %v123_v9, %v123_v9  ;;  %v1310_v11 = vcombine.high %v123_v9, %v123_v9  ;;  %v1701_v16 = vld [vmem:[#allocation7 + $0x18] sm:$0xff]   ;;  %v1704_v19 = vld [vmem:[#allocation7 + $0x30] sm:$0xff]   ;;  %v1707_v22 = vld [vmem:[#allocation8 + $0x8] sm:$0xff]  }
  0x86   :  { %v1705_v20 = vld [vmem:[#allocation7 + $0x38] sm:$0xff]   ;;  %v1708_v23 = vld [vmem:[#allocation8 + $0x10] sm:$0xff]   ;;  %v1710_v25 = vld [vmem:[#allocation8 + $0x20] sm:$0xff]  }
  0x87   :  { %1424 = vmatpush3.bf16.msra.mxu0 %v1652_v26  ;;  %v1709_v24 = vld [vmem:[#allocation8 + $0x18] sm:$0xff]   ;;  %v1711_v26 = vld [vmem:[#allocation8 + $0x28] sm:$0xff]   ;;  %v1720_v6 = vld [vmem:[#allocation10 + $0x30] sm:$0xff]  }
  0x88   :  { %1446 = vmatpush3.bf16.msra.mxu1 %v1653_v27  ;;  %1425 = vmatprep.subr.bf16.mxu0 %v1654_v28  ;;  %v1723_v9 = vld [vmem:[#allocation11 + $0x8] sm:$0xff]  }
  0x89   :  { %1447 = vmatprep.subr.bf16.mxu1 %v1655_v29  ;;  %v1302_v29 = vld [vmem:[%s2121_s2] ss:$0 sm:$0xff] }
  0x8b   :  { %1426 = vmatpush3.bf16.msra.mxu0 %v1656_v30 }
  0x8c   :  { %1448 = vmatpush3.bf16.msra.mxu1 %v1657_v31  ;;  %1455 = vmatprep.subr.bf16.mxu0 %v1662_v38 }
  0x8d   :  { %1477 = vmatprep.subr.bf16.mxu1 %v1663_v39 }
  0x8e   :  { %704 = vmatmul.mubr.bf16.vlgmr.msra.gmra.mrb[0].mxu0 %v1303_v34 }
  0x8f   :  { %744 = vmatmul.mubr.bf16.vlgmr.msra.gmra.mrb[0].mxu1 %v1305_v36  ;;  %1456 = vmatpush3.bf16.msra.mxu0 %v1664_v40 }
  0x90   :  { %1478 = vmatpush3.bf16.msra.mxu1 %v1665_v41  ;;  %1457 = vmatprep.subr.bf16.mxu0 %v1666_v42 }
  0x91   :  { %1479 = vmatprep.subr.bf16.mxu1 %v1667_v43  ;;  %783 = vmatprep.mubr.bf16.mxu0 %v1308_v8  ;;  %v1722_v8 = vld [vmem:[#allocation11] sm:$0xff]  }
  0x92   :  { %823 = vmatprep.mubr.bf16.mxu1 %v1310_v11  ;;  %v1725_v11 = vld [vmem:[#allocation11 + $0x18] sm:$0xff]  }
  0x93   :  { %1458 = vmatpush3.bf16.msra.mxu0 %v1668_v44 }
  0x94   :  { %1480 = vmatpush3.bf16.msra.mxu1 %v1669_v45  ;;  %1459 = vmatprep.subr.bf16.mxu0 %v1670_v46 }
  0x95   :  { %1481 = vmatprep.subr.bf16.mxu1 %v1671_v47 }
  0x97   :  { %1460 = vmatpush3.bf16.msra.mxu0 %v1672_v48 }
  0x98   :  { %1482 = vmatpush3.bf16.msra.mxu1 %v1673_v49  ;;  %1461 = vmatprep.subr.bf16.mxu0 %v1674_v50 }
  0x99   :  { %1483 = vmatprep.subr.bf16.mxu1 %v1675_v51 }
  0x9b   :  { %1462 = vmatpush3.bf16.msra.mxu0 %v1676_v52 }
  0x9c   :  { %1484 = vmatpush3.bf16.msra.mxu1 %v1677_v53  ;;  %1463 = vmatprep.subr.bf16.mxu0 %v1678_v54  ;;  %v1712_v54 = vld [vmem:[#allocation8 + $0x30] sm:$0xff]  }
  0x9d   :  { %1485 = vmatprep.subr.bf16.mxu1 %v1679_v55  ;;  %v1713_v55 = vld [vmem:[#allocation8 + $0x38] sm:$0xff]  }
  0x9f   :  { %1464 = vmatpush3.bf16.msra.mxu0 %v1680_v56  ;;  %v1714_v56 = vld [vmem:[#allocation10] sm:$0xff]  }
  0xa0   :  { %1486 = vmatpush3.bf16.msra.mxu1 %v1681_v57  ;;  %1465 = vmatprep.subr.bf16.mxu0 %v1682_v58  ;;  %v1715_v57 = vld [vmem:[#allocation10 + $0x8] sm:$0xff]   ;;  %v1716_v58 = vld [vmem:[#allocation10 + $0x10] sm:$0xff]  }
  0xa1   :  { %1487 = vmatprep.subr.bf16.mxu1 %v1683_v59  ;;  %v1717_v59 = vld [vmem:[#allocation10 + $0x18] sm:$0xff]  }
  0xa3   :  { %1466 = vmatpush3.bf16.msra.mxu0 %v1684_v60  ;;  %v1718_v60 = vld [vmem:[#allocation10 + $0x20] sm:$0xff]  }
  0xa4   :  { %1488 = vmatpush3.bf16.msra.mxu1 %v1685_v61  ;;  %1467 = vmatprep.subr.bf16.mxu0 %v1686_v62  ;;  %v1719_v61 = vld [vmem:[#allocation10 + $0x28] sm:$0xff]   ;;  %v1375_v62 = vld [vmem:[%s2123_s4] ss:$0 sm:$0xff] }
  0xa5   :  { %1489 = vmatprep.subr.bf16.mxu1 %v1687_v63 }
  0xa7   :  { %1468 = vmatpush3.bf16.msra.mxu0 %v1688_v0 }
  0xa8   :  { %1490 = vmatpush3.bf16.msra.mxu1 %v1689_v1  ;;  %1469 = vmatprep.subr.bf16.mxu0 %v1690_v2 }
  0xa9   :  { %1491 = vmatprep.subr.bf16.mxu1 %v1691_v3 }
  0xab   :  { %1470 = vmatpush3.bf16.msra.mxu0 %v1692_v4 }
  0xac   :  { %1492 = vmatpush3.bf16.msra.mxu1 %v1693_v5  ;;  %1535 = vmatprep.subr.bf16.mxu0 %v1902_v13 }
  0xad   :  { %1555 = vmatprep.subr.bf16.mxu1 %v1902_v13 }
  0xae   :  { %784 = vmatmul.mubr.bf16.vlgmr.msra.gmra.mrb[4].mxu0 %v1307_v7  ;;  %v1721_v7 = vld [vmem:[#allocation10 + $0x38] sm:$0xff]  }
  0xaf   :  { %824 = vmatmul.mubr.bf16.vlgmr.msra.gmra.mrb[4].mxu1 %v1309_v10  ;;  %1536 = vmatpush3.bf16.msra.mxu0 %v1698_v12  ;;  %v1724_v10 = vld [vmem:[#allocation11 + $0x10] sm:$0xff]   ;;  %v1726_v12 = vld [vmem:[#allocation11 + $0x20] sm:$0xff]  }
  0xb0   :  { %1537 = vmatprep.subr.bf16.mxu0 %v1902_v13  ;;  %1551 = vmatprep.mubr.msk.bf16.mxu0 %vm1903_vm0, %v1902_v13 }
  0xb1   :  { %1571 = vmatprep.mubr.msk.bf16.mxu1 %vm1903_vm0, %v1902_v13  ;;  %1556 = vmatpush3.bf16.msra.mxu1 %v1706_v21 }
  0xb2   :  { %1557 = vmatprep.subr.bf16.mxu1 %v1902_v13 }
  0xb3   :  { %1538 = vmatpush3.bf16.msra.mxu0 %v1699_v14  ;;  %v1727_v14 = vld [vmem:[#allocation11 + $0x28] sm:$0xff]  }
  0xb4   :  { %1539 = vmatprep.subr.bf16.mxu0 %v1902_v13 }
  0xb5   :  { %1558 = vmatpush3.bf16.msra.mxu1 %v1707_v22 }
  0xb6   :  { %1559 = vmatprep.subr.bf16.mxu1 %v1902_v13 }
  0xb7   :  { %1540 = vmatpush3.bf16.msra.mxu0 %v1700_v15  ;;  %v1384_v15 = vld [vmem:[%s2125_s6] ss:$0 sm:$0xff] }
  0xb8   :  { %1541 = vmatprep.subr.bf16.mxu0 %v1902_v13 }
  0xb9   :  { %1560 = vmatpush3.bf16.msra.mxu1 %v1708_v23  ;;  %v1728_v23 = vld [vmem:[#allocation11 + $0x30] sm:$0xff]  }
  0xba   :  { %1561 = vmatprep.subr.bf16.mxu1 %v1902_v13 }
  0xbb   :  { %1542 = vmatpush3.bf16.msra.mxu0 %v1701_v16 }
  0xbc   :  { %1543 = vmatprep.subr.bf16.mxu0 %v1902_v13 }
  0xbd   :  { %1562 = vmatpush3.bf16.msra.mxu1 %v1709_v24  ;;  %v1729_v24 = vld [vmem:[#allocation11 + $0x38] sm:$0xff]  }
  0xbe   :  { %1563 = vmatprep.subr.bf16.mxu1 %v1902_v13 }
  0xbf   :  { %1544 = vmatpush3.bf16.msra.mxu0 %v1702_v17 }
  0xc0   :  { %1545 = vmatprep.subr.bf16.mxu0 %v1902_v13 }
  0xc1   :  { %1564 = vmatpush3.bf16.msra.mxu1 %v1710_v25  ;;  %v1393_v25 = vld [vmem:[%s2127_s8] ss:$0 sm:$0xff]  ;;  %s1862_s8 = scalar_lea.vmem %s1291_s13, 128 }
  0xc2   :  { %1565 = vmatprep.subr.bf16.mxu1 %v1902_v13  ;;  %p1863_p6 = scmp.ne.s32.totalorder %s1291_s13, %s1862_s8  ;;  %p1868_p8 = scmp.lt.s32.totalorder %s1862_s8, %s1862_s8 }
  0xc3   :  { %1546 = vmatpush3.bf16.msra.mxu0 %v1703_v18 }
  0xc4   :  { %1547 = vmatprep.subr.bf16.mxu0 %v1902_v13  ;;  %p1869_p9 = por %p1868_p8, %p1867_p7 }
  0xc5   :  { %1566 = vmatpush3.bf16.msra.mxu1 %v1711_v26 }
  0xc6   :  { %1567 = vmatprep.subr.bf16.mxu1 %v1902_v13  ;;  %p1870_p10 = pnand %p1869_p9, %p1863_p6 }
  0xc7   :  { %1548 = vmatpush3.bf16.msra.mxu0 %v1704_v19 }
  0xc8   :  { %1549 = vmatprep.subr.bf16.mxu0 %v1902_v13 }
  0xc9   :  { %1568 = vmatpush3.bf16.msra.mxu1 %v1712_v54 }
  0xca   :  { %1569 = vmatprep.subr.bf16.mxu1 %v1902_v13 }
  0xcb   :  { %1550 = vmatpush3.bf16.msra.mxu0 %v1705_v20 }
  0xcc   :  { %1575 = vmatprep.subr.bf16.mxu0 %v1902_v13 }
  0xcd   :  { %1570 = vmatpush3.bf16.msra.mxu1 %v1713_v55 }
  0xce   :  { %1595 = vmatprep.subr.bf16.mxu1 %v1902_v13 }
 0x161   :  { %v1427_v27 = vpop.f32.mrb[0].mxu0 }
 0x162   :  { %v1449_v28 = vpop.f32.mrb[0].mxu1  ;;  %v1428_v30 = vpop.f32.mrb[1].mxu0 }
 0x163   :  { %v1450_v31 = vpop.f32.mrb[1].mxu1  ;;  %v1429_v32 = vadd.f32 %v1428_v30, %v1427_v27  ;;  %v1430_v34 = vpop.f32.mrb[2].mxu0 }
 0x164   :  { %v1451_v33 = vadd.f32 %v1450_v31, %v1449_v28  ;;  %v1452_v35 = vpop.f32.mrb[2].mxu1  ;;  %v1431_v36 = vpop.f32.mrb[3].mxu0 }
 0x165   :  { %v1453_v37 = vpop.f32.mrb[3].mxu1  ;;  %v706_v38 = vadd.f32 %v1429_v32, %v1302_v29 }
 0x167   :  { %v746_v39 = vadd.f32 %v1451_v33, %v706_v38  ;;  %v1402_v33 = vld [vmem:[%s2129_s10] ss:$0 sm:$0xff] }
 0x181   :  { %v1471_v40 = vpop.f32.mrb[4].mxu0 }
 0x182   :  { %v1493_v41 = vpop.f32.mrb[4].mxu1  ;;  %v1472_v42 = vpop.f32.mrb[5].mxu0 }
 0x183   :  { %v1494_v43 = vpop.f32.mrb[5].mxu1  ;;  %v1473_v44 = vadd.f32 %v1472_v42, %v1471_v40  ;;  %v1474_v46 = vpop.f32.mrb[6].mxu0 }
 0x184   :  { %v1495_v45 = vadd.f32 %v1494_v43, %v1493_v41  ;;  %v1496_v47 = vpop.f32.mrb[6].mxu1  ;;  %v1475_v48 = vpop.f32.mrb[7].mxu0 }
 0x185   :  { %v1497_v49 = vpop.f32.mrb[7].mxu1  ;;  %v786_v50 = vadd.f32 %v1473_v44, %v746_v39 }
 0x187   :  { %v826_v51 = vadd.f32 %v1495_v45, %v786_v50 }
 0x189   :  { %v831_v52 = vmax.f32 %v826_v51, 0.0 }
 0x18b   :  { %v832_v53 = vpack.c.bf16 %v831_v52, %v831_v52 }
 0x18d   :  { %1552 = vmatmul.mubr.bf16.vlgmr.msra.gmra.mrb[8].mxu0 %v832_v53 }
 0x18e   :  { %1591 = vmatprep.mubr.msk.bf16.mxu0 %vm1903_vm0, %v1902_v13  ;;  %1576 = vmatpush3.bf16.msra.mxu0 %v1714_v56 }
 0x18f   :  { %1577 = vmatprep.subr.bf16.mxu0 %v1902_v13 }
 0x192   :  { %1578 = vmatpush3.bf16.msra.mxu0 %v1715_v57 }
 0x193   :  { %1579 = vmatprep.subr.bf16.mxu0 %v1902_v13 }
 0x196   :  { %1580 = vmatpush3.bf16.msra.mxu0 %v1716_v58 }
 0x197   :  { %1581 = vmatprep.subr.bf16.mxu0 %v1902_v13 }
 0x19a   :  { %1582 = vmatpush3.bf16.msra.mxu0 %v1717_v59 }
 0x19b   :  { %1583 = vmatprep.subr.bf16.mxu0 %v1902_v13 }
 0x19e   :  { %1584 = vmatpush3.bf16.msra.mxu0 %v1718_v60 }
 0x19f   :  { %1585 = vmatprep.subr.bf16.mxu0 %v1902_v13 }
 0x1a2   :  { %1586 = vmatpush3.bf16.msra.mxu0 %v1719_v61 }
 0x1a3   :  { %1587 = vmatprep.subr.bf16.mxu0 %v1902_v13 }
 0x1a6   :  { %1588 = vmatpush3.bf16.msra.mxu0 %v1720_v6 }
 0x1a7   :  { %1589 = vmatprep.subr.bf16.mxu0 %v1902_v13 }
 0x1aa   :  { %1590 = vmatpush3.bf16.msra.mxu0 %v1721_v7 }
 0x260   :  { %v938_v63 = vpop.f32.mrb[8].mxu0 }
 0x261   :  { %v939_v0 = vadd.f32 %v1375_v62, %v938_v63  ;;  %v1553_v1 = vpop.f32.mrb[9].mxu0 }
 0x262   :  { %v941_v2 = vpop.f32.mrb[10].mxu0 }
 0x263   :  { %v944_v3 = vmax.f32 %v939_v0, 0.0  ;;  %v1554_v4 = vpop.f32.mrb[11].mxu0 }
 0x265   :  { %v945_v5 = vpack.c.bf16 %v944_v3, %v944_v3 }
 0x267   :  { %1572 = vmatmul.mubr.bf16.vlgmr.msra.gmra.mrb[8].mxu1 %v945_v5 }
 0x268   :  { %1611 = vmatprep.mubr.msk.bf16.mxu1 %vm1903_vm0, %v1902_v13  ;;  %1596 = vmatpush3.bf16.msra.mxu1 %v1722_v8 }
 0x269   :  { %1597 = vmatprep.subr.bf16.mxu1 %v1902_v13 }
 0x26c   :  { %1598 = vmatpush3.bf16.msra.mxu1 %v1723_v9 }
 0x26d   :  { %1599 = vmatprep.subr.bf16.mxu1 %v1902_v13 }
 0x270   :  { %1600 = vmatpush3.bf16.msra.mxu1 %v1724_v10 }
 0x271   :  { %1601 = vmatprep.subr.bf16.mxu1 %v1902_v13 }
 0x274   :  { %1602 = vmatpush3.bf16.msra.mxu1 %v1725_v11 }
 0x275   :  { %1603 = vmatprep.subr.bf16.mxu1 %v1902_v13 }
 0x278   :  { %1604 = vmatpush3.bf16.msra.mxu1 %v1726_v12 }
 0x279   :  { %1605 = vmatprep.subr.bf16.mxu1 %v1902_v13 }
 0x27c   :  { %1606 = vmatpush3.bf16.msra.mxu1 %v1727_v14 }
 0x27d   :  { %1607 = vmatprep.subr.bf16.mxu1 %v1902_v13 }
 0x280   :  { %1608 = vmatpush3.bf16.msra.mxu1 %v1728_v23 }
 0x281   :  { %1609 = vmatprep.subr.bf16.mxu1 %v1902_v13 }
 0x284   :  { %1610 = vmatpush3.bf16.msra.mxu1 %v1729_v24 }
 0x33a   :  { %v1051_v16 = vpop.f32.mrb[8].mxu1 }
 0x33b   :  { %v1052_v17 = vadd.f32 %v1384_v15, %v1051_v16  ;;  %v1573_v18 = vpop.f32.mrb[9].mxu1 }
 0x33c   :  { %v1054_v19 = vpop.f32.mrb[10].mxu1 }
 0x33d   :  { %v1057_v20 = vmax.f32 %v1052_v17, 0.0  ;;  %v1574_v21 = vpop.f32.mrb[11].mxu1 }
 0x33f   :  { %v1058_v22 = vpack.c.bf16 %v1057_v20, %v1057_v20 }
 0x341   :  { %1592 = vmatmul.mubr.bf16.vlgmr.msra.gmra.mrb[12].mxu0 %v1058_v22 }
 0x414   :  { %v1164_v26 = vpop.f32.mrb[12].mxu0 }
 0x415   :  { %v1165_v27 = vadd.f32 %v1393_v25, %v1164_v26  ;;  %v1593_v28 = vpop.f32.mrb[13].mxu0 }
 0x416   :  { %v1167_v29 = vpop.f32.mrb[14].mxu0 }
 0x417   :  { %v1170_v30 = vmax.f32 %v1165_v27, 0.0  ;;  %v1594_v31 = vpop.f32.mrb[15].mxu0 }
 0x419   :  { %v1171_v32 = vpack.c.bf16 %v1170_v30, %v1170_v30 }
 0x41b   :  { %1612 = vmatmul.mubr.bf16.vlgmr.msra.gmra.mrb[12].mxu1 %v1171_v32 }
 0x4ee   :  { %v1277_v13 = vpop.f32.mrb[12].mxu1 }
 0x4ef   :  { %v1278_v34 = vadd.f32 %v1402_v33, %v1277_v13  ;;  %v1613_v35 = vpop.f32.mrb[13].mxu1 }
 0x4f0   :  { %v1280_v36 = vpop.f32.mrb[14].mxu1 }
 0x4f1   :  { %1283 = vst [vmem:[#allocation13] sm:$0xff] %v1278_v34  ;;  %v1614_v37 = vpop.f32.mrb[15].mxu1 }
 0x4f2   :  { %1873 = shalt.err (!%p1870_p10)
}
 0x4f3   :  { %s1874_s10 = scalar_lea.hbm %s2130_s11, 128 }
 0x4f4   :  { %p1875_p11 = scmp.ne.s32.totalorder %s2130_s11, %s1874_s10  ;;  %p1878_p12 = scmp.lt.u32.totalorder %s1874_s10, %s2130_s11 }
 0x4f6   :  { %p1880_p13 = pnand %p1878_p12, %p1875_p11 }
 0x4f8   :  { %1883 = shalt.err (!%p1880_p13)
}
 0x4f9   :  { %1293 = dma.vmem_to_hbm [thread:$0]  %s1291_s13, 128, %s2130_s11, [#allocation4]  }
 0x4fa   :  { %1892 = dma.done.wait [#allocation4], 128  }
 0x4fb   :  { %1893 = vsyncadd [#allocation4], 4294967168 }
 0x4fc   :  { %1297 = vsyncpa [#allocation3], 1 }
 0x4fd   :  { %1298 = vsyncpa [#allocation6], 1 }
 0x4fe   :  { %1299 = vsyncpa [#allocation9], 1 }
 0x4ff   :  { %1300 = vsyncpa [#allocation12], 1 }
 0x500   :  { %1301 = vsyncpa [#allocation4], 1 }

</bundles_post_ra>
